<compile_context>
chip_gen: v7x
topology: tpu7x:2x2x1
jax: 0.10.0
libtpu: 0.0.40
codegen_flags: <defaults>
</compile_context>

<pallas_src>
import jax
import jax.numpy as jnp
from jax.experimental import pallas as pl
from jax.experimental.pallas import tpu as pltpu

# ----- problem sizes (small, consistent with the module) -----
DIM_W = 32      # dim_w
NUM_PROP = 2    # num_prop (forward indexes prop_pred[0, 0] and [0, 1])
K = 16          # output dim of each decoder.wp_lin_list[idx]


def opt_kernel(prop_ref, lam1_ref, lam2_ref,
               w_ref, mask_ref, wpw_ref, wpb_ref, pa_ref, pb_ref,
               pred_ref, loss_ref):
    # prop_ref, lam1_ref, lam2_ref : SMEM (NUM_PROP,), (1,), (1,)
    # w_ref    : VMEM (1, DIM_W)
    # mask_ref : VMEM (NUM_PROP, DIM_W)
    # wpw_ref  : VMEM (NUM_PROP, DIM_W, K)
    # wpb_ref  : VMEM (NUM_PROP, K)
    # pa_ref   : VMEM (NUM_PROP, 1)
    # pb_ref   : VMEM (NUM_PROP, 1)
    # pred_ref : VMEM (NUM_PROP, K)   output (== prop_pred transposed)
    # loss_ref : SMEM (4,)            output [loss_range1, loss_value1, loss_value2, loss_inf]

    # ---- fused decoder path (all VPU/XLU, no MXU round-trips) ----
    # w.repeat(num_prop, 1) * mask  (sublane broadcast of the (1, DIM_W) row)
    wm = w_ref[...] * mask_ref[...]                          # (P, D)
    # per-property matvec as broadcast-multiply + reduce over DIM_W
    prod = wm[:, :, None] * wpw_ref[...]                     # (P, D, K)
    wp = jnp.sum(prod, axis=1) + wpb_ref[...]                # (P, K)
    # property_lin_list[p](x) + x  with Linear(1,1)  ==  (a + 1) * x + b
    pred = (pa_ref[...] + 1.0) * wp + pb_ref[...]            # (P, K)
    pred_ref[...] = pred                                     # one full-tile store

    # ---- fused scalar loss arithmetic (scalar core) ----
    p00 = pred_ref[0, 0]          # torch prop_pred[0, 0]
    p01 = pred_ref[1, 0]          # torch prop_pred[0, 1]
    prop0 = prop_ref[0]
    prop1 = prop_ref[1]
    lam1 = lam1_ref[0]
    lam2 = lam2_ref[0]
    loss_ref[0] = lam1 * (0.5 - p01) + lam2 * (p01 - 0.8)          # loss_range1
    loss_ref[1] = jnp.abs(prop0 - p00) + jnp.abs(prop1 - p01)      # loss_value1
    loss_ref[2] = jnp.abs(prop0 - p00)                             # loss_value2
    loss_ref[3] = -p01                                             # loss_inf


def _pallas_forward(prop, lam1, lam2, w, mask, wp_w, wp_b, prop_a, prop_b):
    return pl.pallas_call(
        opt_kernel,
        out_shape=(
            jax.ShapeDtypeStruct((NUM_PROP, K), jnp.float32),   # pred (P, K)
            jax.ShapeDtypeStruct((4,), jnp.float32),            # packed losses
        ),
        in_specs=[
            pl.BlockSpec(memory_space=pltpu.MemorySpace.SMEM),  # prop
            pl.BlockSpec(memory_space=pltpu.MemorySpace.SMEM),  # lambda1
            pl.BlockSpec(memory_space=pltpu.MemorySpace.SMEM),  # lambda2
            pl.BlockSpec(memory_space=pltpu.MemorySpace.VMEM),  # w
            pl.BlockSpec(memory_space=pltpu.MemorySpace.VMEM),  # mask
            pl.BlockSpec(memory_space=pltpu.MemorySpace.VMEM),  # wp_w
            pl.BlockSpec(memory_space=pltpu.MemorySpace.VMEM),  # wp_b
            pl.BlockSpec(memory_space=pltpu.MemorySpace.VMEM),  # prop_a
            pl.BlockSpec(memory_space=pltpu.MemorySpace.VMEM),  # prop_b
        ],
        out_specs=(
            pl.BlockSpec(memory_space=pltpu.MemorySpace.VMEM),
            pl.BlockSpec(memory_space=pltpu.MemorySpace.SMEM),
        ),
    )(prop, lam1, lam2, w, mask, wp_w, wp_b, prop_a, prop_b)


def optimization_forward(prop, mask, params):
    """Reproduces Optimization.forward(prop, mask)."""
    w = params["w"]
    lam1, lam2, lam3, lam4 = (params["lambda1"], params["lambda2"],
                              params["lambda3"], params["lambda4"])

    pred_pk, losses = _pallas_forward(
        prop, lam1, lam2, w, mask,
        params["wp_w"], params["wp_b"], params["prop_a"], params["prop_b"])

    prop_pred = pred_pk.T            # (K, NUM_PROP) to match torch.cat(..., dim=-1)
    loss_range1 = losses[0:1]        # shape (1,), like lambda1*(...) in torch
    loss_value1 = losses[1]
    loss_value2 = losses[2]
    loss_inf = losses[3]

    return (prop_pred, loss_range1, loss_value1, loss_value2, loss_inf,
            lam1, lam2, lam3, lam4, w)


def reference_forward(prop, mask, params):
    """Pure-JAX reference of the torch module (for correctness check)."""
    w = params["w"]
    wm = jnp.broadcast_to(w, mask.shape) * mask
    wp = jnp.einsum("pd,pdk->pk", wm, params["wp_w"]) + params["wp_b"]
    pred = (params["prop_a"] + 1.0) * wp + params["prop_b"]        # (P, K)
    prop_pred = pred.T                                             # (K, P)
    lam1, lam2 = params["lambda1"], params["lambda2"]
    p00 = prop_pred[0, 0]
    p01 = prop_pred[0, 1]
    loss_range1 = lam1 * (0.5 - p01) + lam2 * (p01 - 0.8)
    loss_value1 = jnp.abs(prop[0] - p00) + jnp.abs(prop[1] - p01)
    loss_value2 = jnp.abs(prop[0] - p00)
    loss_inf = -p01
    return prop_pred, loss_range1, loss_value1, loss_value2, loss_inf


def init_params(key):
    """Deterministic synthetic parameters (randn-style), matching the module shapes."""
    ks = jax.random.split(key, 8)
    return {
        "w": jax.random.normal(ks[0], (1, DIM_W), jnp.float32),
        "wp_w": jax.random.normal(ks[1], (NUM_PROP, DIM_W, K), jnp.float32) / jnp.sqrt(DIM_W),
        "wp_b": jax.random.normal(ks[2], (NUM_PROP, K), jnp.float32) * 0.01,
        "prop_a": jax.random.normal(ks[3], (NUM_PROP, 1), jnp.float32),
        "prop_b": jax.random.normal(ks[4], (NUM_PROP, 1), jnp.float32) * 0.01,
        "lambda1": jax.random.normal(ks[5], (1,), jnp.float32),
        "lambda2": jax.random.normal(ks[6], (1,), jnp.float32),
        "lambda3": jax.random.normal(ks[7], (1,), jnp.float32),
        "lambda4": jax.random.normal(jax.random.fold_in(key, 99), (1,), jnp.float32),
    }


if __name__ == "__main__":
    key = jax.random.PRNGKey(0)
    k_param, k_prop, k_mask = jax.random.split(key, 3)

    params = init_params(k_param)
    prop = jax.random.normal(k_prop, (NUM_PROP,), jnp.float32)
    mask = (jax.random.uniform(k_mask, (NUM_PROP, DIM_W)) > 0.3).astype(jnp.float32)

    fwd = jax.jit(optimization_forward)
    outs = jax.block_until_ready(fwd(prop, mask, params))

    prop_pred = outs[0]
    assert prop_pred.shape == (K, NUM_PROP), prop_pred.shape
    assert all(bool(jnp.all(jnp.isfinite(o))) for o in outs)

    # correctness vs. pure-JAX reference
    ref = reference_forward(prop, mask, params)
    for got, exp in zip(outs[:5], ref):
        assert bool(jnp.allclose(got, exp, atol=1e-4, rtol=1e-4)), (got, exp)

    print("KERNEL_OK")
</pallas_src>

<mosaic_0001>
module attributes {stable_mosaic.version = 11 : i64} {
  func.func @opt_kernel(%arg0: memref<2xf32, #tpu.memory_space<smem>>, %arg1: memref<1xf32, #tpu.memory_space<smem>>, %arg2: memref<1xf32, #tpu.memory_space<smem>>, %arg3: memref<1x32xf32, #tpu.memory_space<vmem>>, %arg4: memref<2x32xf32, #tpu.memory_space<vmem>>, %arg5: memref<2x32x16xf32, #tpu.memory_space<vmem>>, %arg6: memref<2x16xf32, #tpu.memory_space<vmem>>, %arg7: memref<2x1xf32, #tpu.memory_space<vmem>>, %arg8: memref<2x1xf32, #tpu.memory_space<vmem>>, %arg9: memref<2x16xf32, #tpu.memory_space<vmem>>, %arg10: memref<4xf32, #tpu.memory_space<smem>>) attributes {dimension_semantics = [], scalar_prefetch = 0 : i64, scratch_operands = 0 : i64, tpu.core_type = #tpu.core_type<tc>} {
    %c0 = arith.constant 0 : index
    %c0_0 = arith.constant 0 : index
    %0 = vector.load %arg3[%c0, %c0_0] : memref<1x32xf32, #tpu.memory_space<vmem>>, vector<1x32xf32>
    %c0_1 = arith.constant 0 : index
    %c0_2 = arith.constant 0 : index
    %1 = vector.load %arg4[%c0_1, %c0_2] : memref<2x32xf32, #tpu.memory_space<vmem>>, vector<2x32xf32>
    %2 = vector.broadcast %0 : vector<1x32xf32> to vector<2x32xf32>
    %3 = arith.mulf %2, %1 : vector<2x32xf32>
    %4 = vector.shape_cast %3 : vector<2x32xf32> to vector<2x32x1xf32>
    %c0_3 = arith.constant 0 : index
    %c0_4 = arith.constant 0 : index
    %c0_5 = arith.constant 0 : index
    %5 = vector.load %arg5[%c0_3, %c0_4, %c0_5] : memref<2x32x16xf32, #tpu.memory_space<vmem>>, vector<2x32x16xf32>
    %6 = vector.broadcast %4 : vector<2x32x1xf32> to vector<2x32x16xf32>
    %7 = arith.mulf %6, %5 : vector<2x32x16xf32>
    %cst = arith.constant dense<0.000000e+00> : vector<2x16xf32>
    %8 = vector.multi_reduction <add>, %7, %cst [1] : vector<2x32x16xf32> to vector<2x16xf32>
    %c0_6 = arith.constant 0 : index
    %c0_7 = arith.constant 0 : index
    %9 = vector.load %arg6[%c0_6, %c0_7] : memref<2x16xf32, #tpu.memory_space<vmem>>, vector<2x16xf32>
    %10 = arith.addf %8, %9 : vector<2x16xf32>
    %c0_8 = arith.constant 0 : index
    %c0_9 = arith.constant 0 : index
    %11 = vector.load %arg7[%c0_8, %c0_9] : memref<2x1xf32, #tpu.memory_space<vmem>>, vector<2x1xf32>
    %cst_10 = arith.constant 1.000000e+00 : f32
    %12 = vector.broadcast %cst_10 : f32 to vector<2x1xf32>
    %13 = arith.addf %11, %12 : vector<2x1xf32>
    %14 = vector.broadcast %13 : vector<2x1xf32> to vector<2x16xf32>
    %15 = arith.mulf %14, %10 : vector<2x16xf32>
    %c0_11 = arith.constant 0 : index
    %c0_12 = arith.constant 0 : index
    %16 = vector.load %arg8[%c0_11, %c0_12] : memref<2x1xf32, #tpu.memory_space<vmem>>, vector<2x1xf32>
    %17 = vector.broadcast %16 : vector<2x1xf32> to vector<2x16xf32>
    %18 = arith.addf %15, %17 : vector<2x16xf32>
    %c0_13 = arith.constant 0 : index
    %c0_14 = arith.constant 0 : index
    %19 = vector.load %arg9[%c0_13, %c0_14] : memref<2x16xf32, #tpu.memory_space<vmem>>, vector<2x16xf32>
    tpu.vector_store %arg9[%c0_13, %c0_14], %18 {strides = array<i32>} : memref<2x16xf32, #tpu.memory_space<vmem>>, vector<2x16xf32>,
    %c0_15 = arith.constant 0 : index
    %c0_16 = arith.constant 0 : index
    %20 = vector.load %arg9[%c0_15, %c0_16] : memref<2x16xf32, #tpu.memory_space<vmem>>, vector<1x1xf32>
    %21 = vector.extract %20[0, 0] : f32 from vector<1x1xf32>
    %c1 = arith.constant 1 : index
    %c0_17 = arith.constant 0 : index
    %22 = vector.load %arg9[%c1, %c0_17] : memref<2x16xf32, #tpu.memory_space<vmem>>, vector<1x1xf32>
    %23 = vector.extract %22[0, 0] : f32 from vector<1x1xf32>
    %c0_18 = arith.constant 0 : index
    %24 = memref.load %arg0[%c0_18] : memref<2xf32, #tpu.memory_space<smem>>
    %c1_19 = arith.constant 1 : index
    %25 = memref.load %arg0[%c1_19] : memref<2xf32, #tpu.memory_space<smem>>
    %c0_20 = arith.constant 0 : index
    %26 = memref.load %arg1[%c0_20] : memref<1xf32, #tpu.memory_space<smem>>
    %c0_21 = arith.constant 0 : index
    %27 = memref.load %arg2[%c0_21] : memref<1xf32, #tpu.memory_space<smem>>
    %cst_22 = arith.constant 5.000000e-01 : f32
    %28 = arith.subf %cst_22, %23 : f32
    %29 = arith.mulf %26, %28 : f32
    %cst_23 = arith.constant 8.000000e-01 : f32
    %30 = arith.subf %23, %cst_23 : f32
    %31 = arith.mulf %27, %30 : f32
    %32 = arith.addf %29, %31 : f32
    %c0_24 = arith.constant 0 : index
    %33 = memref.load %arg10[%c0_24] : memref<4xf32, #tpu.memory_space<smem>>
    memref.store %32, %arg10[%c0_24] : memref<4xf32, #tpu.memory_space<smem>>
    %34 = arith.subf %24, %21 : f32
    %35 = math.absf %34 : f32
    %36 = arith.subf %25, %23 : f32
    %37 = math.absf %36 : f32
    %38 = arith.addf %35, %37 : f32
    %c1_25 = arith.constant 1 : index
    %39 = memref.load %arg10[%c1_25] : memref<4xf32, #tpu.memory_space<smem>>
    memref.store %38, %arg10[%c1_25] : memref<4xf32, #tpu.memory_space<smem>>
    %40 = arith.subf %24, %21 : f32
    %41 = math.absf %40 : f32
    %c2 = arith.constant 2 : index
    %42 = memref.load %arg10[%c2] : memref<4xf32, #tpu.memory_space<smem>>
    memref.store %41, %arg10[%c2] : memref<4xf32, #tpu.memory_space<smem>>
    %cst_26 = arith.constant 0.000000e+00 : f32
    %43 = arith.subf %cst_26, %23 : f32
    %c3 = arith.constant 3 : index
    %44 = memref.load %arg10[%c3] : memref<4xf32, #tpu.memory_space<smem>>
    memref.store %43, %arg10[%c3] : memref<4xf32, #tpu.memory_space<smem>>
    return
  }
}

</mosaic_0001>

<bundles_post_ra>
// kernel: optimization_forward.1
= control target key start
LH: loop header
LB: loop body
LE: loop exit
PB: predicated region body
PF: predicated region fallthrough
CT: control target
= control target key end

     0   :  { %18 = vsyncpa [#allocation6], 0  ;;  %s423_s0 = inlined_call_operand.vmem [shape: f32[2], index: 0, kind: input, shape index: {}]   ;;  %s424_s1 = inlined_call_operand.<no memory space> [shape: f32[1], index: 1, kind: input, shape index: {}]   ;;  %s425_s2 = inlined_call_operand.<no memory space> [shape: f32[1], index: 2, kind: input, shape index: {}]   ;;  %s426_s3 = inlined_call_operand.vmem [shape: f32[1,32], index: 3, kind: input, shape index: {}]   ;;  %s427_s4 = inlined_call_operand.vmem [shape: f32[2,32], index: 4, kind: input, shape index: {}]   ;;  %s428_s5 = inlined_call_operand.vmem [shape: f32[2,32,16], index: 5, kind: input, shape index: {}]   ;;  %s429_s6 = inlined_call_operand.vmem [shape: f32[2,16], index: 6, kind: input, shape index: {}]   ;;  %s430_s7 = inlined_call_operand.vmem [shape: f32[2,1], index: 7, kind: input, shape index: {}]   ;;  %s431_s8 = inlined_call_operand.vmem [shape: f32[2,1], index: 8, kind: input, shape index: {}]   ;;  %s432_s9 = inlined_call_operand.hbm [shape: f32[2,16], index: 9, kind: output, shape index: {0}]   ;;  %s433_s10 = inlined_call_operand.vmem [shape: f32[4], index: 10, kind: output, shape index: {1}]  }
   0x1   :  { %19 = vsyncpa [#allocation5], 0 }
   0x2   :  { %20 = vsyncpa [#allocation7], 0  ;;  %s27_s15 = sshll.u32 %s423_s0, 4  ;;  %s28_s15 = int_to_ptr.vmem [resolvable:$true] %s27_s15 }
   0x3   :  { %s241_s16 = scalar_lea.vmem %s28_s15, 16  ;;  %p246_p1 = scmp.lt.s32.totalorder %s28_s15, %s28_s15 }
   0x4   :  { %p242_p0 = scmp.ne.s32.totalorder %s28_s15, %s241_s16  ;;  %p247_p2 = scmp.lt.s32.totalorder %s241_s16, %s241_s16 }
   0x6   :  { %p248_p3 = por %p247_p2, %p246_p1 }
   0x8   :  { %p249_p4 = pnand %p248_p3, %p242_p0 }
   0xa   :  { %252 = shalt.err (!%p249_p4)
}
   0xb   :  { %s293_s17 = smov [#allocation4]  }
   0xc   :  { %30 = dma.vmem_to_smem %s28_s15, 16, %s293_s17, [#allocation6]  }
   0xd   :  { %287 = dma.done.wait [#allocation6], 16  }
   0xe   :  { %288 = vsyncadd [#allocation6], 4294967280 }
   0xf   :  { %50 = sfence }
  0x10   :  { %v228_v0 = vld [vmem:[%s426_s3] ss:$0 sm:$0xff]  ;;  %v60_v2 = vlaneseq  ;;  %v294_v3 = vmov 0   ;;  %v103_v15 = vld [vmem:[%s428_s5 + $0x28] sm:$0xff]  ;;  %v104_v23 = vld [vmem:[%s428_s5 + $0x30] sm:$0xff]  ;;  %vm114_vm0 = vcmask 130048  }
  0x11   :  { %v52_v1 = vld [vmem:[%s427_s4] sm:$0x3]  ;;  %239 = vset.pattern.permute.xlu0 %v294_v3  ;;  %240 = vset.pattern.permute.xlu1 %v294_v3  ;;  %v99_v16 = vld [vmem:[%s428_s5 + $0x8] sm:$0xff]  ;;  %v100_v24 = vld [vmem:[%s428_s5 + $0x10] sm:$0xff]  ;;  %vm158_vm1 = vcmask 1041409   ;;  %s295_s18 = smov [#allocation8]  }
  0x12   :  { %v59_v4 = vmul.f32 %v228_v0, %v52_v1  ;;  %v61_v5 = vshrl.u32 %v60_v2, 7  ;;  %v148_v10 = vld [vmem:[%s430_s7] sm:$0x3]  ;;  %v105_v33 = vld [vmem:[%s428_s5 + $0x38] sm:$0xff]  ;;  %s204_s19 = sshll.u32 %s295_s18, 4  ;;  %vm169_vm2 = vcmask 123904   ;;  %s205_s19 = int_to_ptr.vmem [resolvable:$true] %s204_s19 }
  0x13   :  { %v149_v11 = vadd.f32 1.0, %v148_v10  ;;  %v162_v12 = vld [vmem:[%s431_s8] sm:$0x3]  ;;  %v101_v34 = vld [vmem:[%s428_s5 + $0x18] sm:$0xff]  ;;  %p258_p6 = scmp.lt.s32.totalorder %s205_s19, %s205_s19 }
  0x14   :  { %v81_v6 = vsub.s32 1, %v61_v5  ;;  %v62_v7 = vsub.s32 0, %v61_v5  ;;  %v102_v17 = vld [vmem:[%s428_s5 + $0x20] sm:$0xff] }
  0x15   :  { %v98_v18 = vld [vmem:[%s428_s5] sm:$0xff] }
  0x16   :  { %v82_v8 = vrot.slane %v59_v4, %v81_v6  ;;  %v63_v9 = vrot.slane %v59_v4, %v62_v7  ;;  %v141_v57 = vld [vmem:[%s429_s6] sm:$0x3]  ;;  %s253_s6 = scalar_lea.vmem %s205_s19, 32 }
  0x17   :  { %v143_v62 = vrot.slane %v141_v57, 1  ;;  %p254_p5 = scmp.ne.s32.totalorder %s205_s19, %s253_s6  ;;  %p259_p7 = scmp.lt.s32.totalorder %s253_s6, %s253_s6 }
  0x18   :  { %84 = vbcast.lane.b32.xlu0 %v82_v8, 256  ;;  %65 = vbcast.lane.b32.xlu1 %v63_v9, 256 }
  0x19   :  { %p260_p8 = por %p259_p7, %p258_p6 }
  0x1b   :  { %p261_p9 = pnand %p260_p8, %p254_p5 }
  0x1c   :  { %88 = vbcast.lane.b32.xlu0 %v82_v8, 264  ;;  %69 = vbcast.lane.b32.xlu1 %v63_v9, 264 }
  0x20   :  { %92 = vbcast.lane.b32.xlu0 %v82_v8, 272  ;;  %73 = vbcast.lane.b32.xlu1 %v63_v9, 272 }
  0x24   :  { %96 = vbcast.lane.b32.xlu0 %v82_v8, 280  ;;  %77 = vbcast.lane.b32.xlu1 %v63_v9, 280 }
  0x28   :  { %152 = vperm.xlu0 %239, %v149_v11   ;;  %165 = vperm.xlu1 %240, %v162_v12  }
  0x8a   :  { %v85_v13 = vpop.permute.xlu0 %84  ;;  %v66_v14 = vpop.permute.xlu1 %65 }
  0x8b   :  { %v110_v25 = vmul.f32 %v102_v17, %v85_v13  ;;  %v106_v26 = vmul.f32 %v98_v18, %v66_v14 }
  0x8d   :  { %v128_v35 = vsel %vm114_vm0, %v110_v25, 0.0  ;;  %v115_v36 = vsel %vm114_vm0, %v106_v26, 0.0 }
  0x8e   :  { %v89_v19 = vpop.permute.xlu0 %88  ;;  %v70_v20 = vpop.permute.xlu1 %69 }
  0x8f   :  { %v111_v21 = vmul.f32 %v103_v15, %v89_v19  ;;  %v107_v22 = vmul.f32 %v99_v16, %v70_v20 }
  0x91   :  { %v129_v29 = vsel %vm114_vm0, %v111_v21, 0.0  ;;  %v116_v30 = vsel %vm114_vm0, %v107_v22, 0.0 }
  0x92   :  { %v93_v27 = vpop.permute.xlu0 %92  ;;  %v74_v28 = vpop.permute.xlu1 %73  ;;  %v130_v39 = vadd.f32 %v129_v29, %v128_v35  ;;  %v117_v40 = vadd.f32 %v116_v30, %v115_v36 }
  0x93   :  { %v112_v31 = vmul.f32 %v104_v23, %v93_v27  ;;  %v108_v32 = vmul.f32 %v100_v24, %v74_v28 }
  0x95   :  { %v131_v37 = vsel %vm114_vm0, %v112_v31, 0.0  ;;  %v118_v38 = vsel %vm114_vm0, %v108_v32, 0.0 }
  0x96   :  { %v97_v41 = vpop.permute.xlu0 %96  ;;  %v78_v42 = vpop.permute.xlu1 %77  ;;  %v132_v45 = vadd.f32 %v131_v37, %v130_v39  ;;  %v119_v46 = vadd.f32 %v118_v38, %v117_v40 }
  0x97   :  { %v113_v43 = vmul.f32 %v105_v33, %v97_v41  ;;  %v109_v44 = vmul.f32 %v101_v34, %v78_v42 }
  0x99   :  { %v133_v47 = vsel %vm114_vm0, %v113_v43, 0.0  ;;  %v120_v48 = vsel %vm114_vm0, %v109_v44, 0.0 }
  0x9a   :  { %v134_v49 = vadd.f32 %v133_v47, %v132_v45  ;;  %v121_v50 = vadd.f32 %v120_v48, %v119_v46 }
  0x9c   :  { %v135_v51 = vrot.slane %v134_v49, 4  ;;  %v122_v52 = vrot.slane %v121_v50, 4 }
  0x9e   :  { %v136_v53 = vadd.f32 %v135_v51, %v134_v49  ;;  %v123_v54 = vadd.f32 %v122_v52, %v121_v50 }
  0xa0   :  { %v137_v55 = vrot.slane %v136_v53, 2  ;;  %v124_v56 = vrot.slane %v123_v54, 2 }
  0xa2   :  { %v138_v58 = vadd.f32 %v137_v55, %v136_v53  ;;  %v125_v59 = vadd.f32 %v124_v56, %v123_v54 }
  0xa4   :  { %v139_v60 = vrot.slane %v138_v58, 1  ;;  %v126_v61 = vrot.slane %v125_v59, 1 }
  0xa6   :  { %v140_v63 = vadd.f32 %v139_v60, %v138_v58  ;;  %v127_v0 = vadd.f32 %v126_v61, %v125_v59 }
  0xa7   :  { %v153_v3 = vpop.permute.xlu0 %152  ;;  %v166_v6 = vpop.permute.xlu1 %165 }
  0xa8   :  { %v147_v1 = vadd.f32 %v143_v62, %v140_v63  ;;  %v146_v4 = vadd.f32 %v141_v57, %v127_v0 }
  0xaa   :  { %v157_v2 = vrot.slane %v147_v1, 7 }
  0xac   :  { %v159_v5 = vsel %vm158_vm1, %v157_v2, %v146_v4 }
  0xad   :  { %v161_v7 = vmul.f32 %v159_v5, %v153_v3 }
  0xaf   :  { %v168_v8 = vadd.f32 %v166_v6, %v161_v7 }
  0xb1   :  { %170 = vst.msk [vmem:[#allocation8] sm:$0x3] %vm169_vm2, %v168_v8 }
  0xb2   :  { %264 = shalt.err (!%p261_p9)
}
  0xb3   :  { %s265_s0 = scalar_lea.hbm %s432_s9, 32 }
  0xb4   :  { %p266_p10 = scmp.ne.s32.totalorder %s432_s9, %s265_s0  ;;  %p269_p11 = scmp.lt.u32.totalorder %s265_s0, %s432_s9 }
  0xb6   :  { %p271_p12 = pnand %p269_p11, %p266_p10 }
  0xb8   :  { %274 = shalt.err (!%p271_p12)
}
  0xb9   :  { %207 = dma.vmem_to_hbm [thread:$0]  %s205_s19, 32, %s432_s9, [#allocation5]   ;;  %v171_v9 = vld [vmem:[#allocation8] sm:$0x1]  ;;  %v173_v10 = vld [vmem:[#allocation8 + $0x1] sm:$0x1] }
  0xba   :  { %231 = vpush %v171_v9  ;;  %s175_s26 = sld [smem:[#allocation4]]  ;;  %s229_s7 = sld [smem:[#allocation4 + $0x1]] }
  0xbb   :  { %233 = vpush %v173_v10  ;;  %s214_s12 = sshll.u32 %s433_s10, 4  ;;  %s215_s12 = int_to_ptr.vmem [resolvable:$true] %s214_s12 }
  0xbc   :  { %s275_s10 = scalar_lea.vmem %s215_s12, 16  ;;  %p280_p0 = scmp.lt.s32.totalorder %s215_s12, %s215_s12 }
  0xbd   :  { %p276_p13 = scmp.ne.s32.totalorder %s215_s12, %s275_s10  ;;  %p281_p1 = scmp.lt.s32.totalorder %s275_s10, %s275_s10 }
  0xbf   :  { %p282_p2 = por %p281_p1, %p280_p0 }
  0xc1   :  { %p283_p3 = pnand %p282_p2, %p276_p13 }
  0xeb   :  { %s232_s27 = spop %231 }
  0xec   :  { %s186_s28 = ssub.f32 %s175_s26, %s232_s27  ;;  %s234_s29 = spop %233 }
  0xed   :  { %s179_s8 = ssub.f32 0.5, %s234_s29 }
  0xee   :  { %s187_s13 = sand.u32 2147483647, %s186_s28  ;;  %s230_s14 = sadd.f32 -0.8, %s234_s29 }
  0xef   :  { %194 = sst [smem:[#allocation9 + $0x2]] %s187_s13  ;;  %s180_s9 = smul.f32 %s179_s8, %s424_s1 }
  0xf0   :  { %s182_s18 = smul.f32 %s230_s14, %s425_s2  ;;  %s188_s19 = ssub.f32 %s229_s7, %s234_s29 }
  0xf1   :  { %s195_s6 = ssub.f32 0.0, %s234_s29 }
  0xf2   :  { %s183_s20 = sadd.f32 %s182_s18, %s180_s9  ;;  %s189_s21 = sand.u32 2147483647, %s188_s19 }
  0xf3   :  { %s190_s0 = sadd.f32 %s189_s21, %s187_s13 }
  0xf4   :  { %185 = sst [smem:[#allocation9]] %s183_s20 }
  0xf5   :  { %192 = sst [smem:[#allocation9 + $0x1]] %s190_s0 }
  0xf6   :  { %197 = sst [smem:[#allocation9 + $0x3]] %s195_s6 }
  0xf7   :  { %286 = shalt.err (!%p283_p3)
}
  0xf8   :  { %s296_s1 = smov [#allocation9]  }
  0xf9   :  { %217 = dma.smem_to_vmem %s296_s1, 16, %s215_s12, [#allocation7]  }
  0xfa   :  { %289 = dma.done.wait [#allocation5], 32  }
  0xfb   :  { %290 = vsyncadd [#allocation5], 4294967264 }
  0xfc   :  { %291 = dma.done.wait [#allocation7], 16  }
  0xfd   :  { %292 = vsyncadd [#allocation7], 4294967280 }
  0xfe   :  { %224 = sfence }
  0xff   :  { %225 = vsyncpa [#allocation5], 1 }
 0x100   :  { %226 = vsyncpa [#allocation6], 1 }
 0x101   :  { %227 = vsyncpa [#allocation7], 1 }

</bundles_post_ra>
